<compile_context>
chip_gen: v7x
topology: tpu7x:2x2x1
jax: 0.10.0
libtpu: 0.0.40
codegen_flags: <defaults>
</compile_context>

<pallas_src>
from functools import partial

import numpy as np
import jax
import jax.numpy as jnp
from jax.experimental import pallas as pl
from jax.experimental.pallas import tpu as pltpu


def _cdiv(a, b):
    return -(-a // b)


# ----------------------------------------------------------------------------
# Parameter / basis construction (deterministic, eval-mode semantics)
# ----------------------------------------------------------------------------
def hann_window_padded(win_length: int, n_fft: int) -> np.ndarray:
    # torch.hann_window(win_length, periodic=False) == np.hanning(win_length),
    # centered-padded to n_fft exactly like torch.stft does.
    w = np.hanning(win_length).astype(np.float64)
    left = (n_fft - win_length) // 2
    right = n_fft - win_length - left
    return np.pad(w, (left, right)).astype(np.float32)  # (n_fft,)


def kaldi_mel_banks(num_bins, n_fft, sample_freq, low_freq, high_freq) -> np.ndarray:
    # Reimplementation of torchaudio.compliance.kaldi.get_mel_banks
    # (vtln_warp_factor == 1.0 -> no warping path). Shape (num_bins, n_fft // 2).
    num_fft_bins = n_fft // 2
    nyquist = 0.5 * sample_freq
    if high_freq <= 0.0:
        high_freq += nyquist
    fft_bin_width = sample_freq / n_fft

    def mel(f):
        return 1127.0 * np.log(1.0 + f / 700.0)

    mel_low = mel(low_freq)
    mel_high = mel(high_freq)
    mel_delta = (mel_high - mel_low) / (num_bins + 1)

    b = np.arange(num_bins, dtype=np.float64)[:, None]
    left_mel = mel_low + b * mel_delta
    center_mel = mel_low + (b + 1.0) * mel_delta
    right_mel = mel_low + (b + 2.0) * mel_delta

    mel_f = mel(fft_bin_width * np.arange(num_fft_bins, dtype=np.float64))[None, :]
    up_slope = (mel_f - left_mel) / (center_mel - left_mel)
    down_slope = (right_mel - mel_f) / (right_mel - center_mel)
    banks = np.maximum(0.0, np.minimum(up_slope, down_slope))
    return banks.astype(np.float32)


def fused_dft_basis(win_length: int, n_fft: int) -> np.ndarray:
    # Window-folded rDFT basis with the Nyquist bin dropped:
    #   basis[:, :128]  = w[n] *  cos(2*pi*n*k/n_fft)
    #   basis[:, 128:]  = w[n] * -sin(2*pi*n*k/n_fft)
    # One (n_fft, 2*n_fft//2) matmul gives [Re | Im] of the windowed STFT.
    n_rbins = n_fft // 2
    w = hann_window_padded(win_length, n_fft).astype(np.float64)[:, None]
    n = np.arange(n_fft, dtype=np.float64)[:, None]
    k = np.arange(n_rbins, dtype=np.float64)[None, :]
    ang = 2.0 * np.pi * n * k / n_fft
    basis = np.concatenate([np.cos(ang), -np.sin(ang)], axis=1) * w
    return basis.astype(np.float32)  # (n_fft, 2 * n_rbins)


# ----------------------------------------------------------------------------
# Pallas kernel: assemble overlapping frames from a hop-strided slab, then
# windowed rDFT (hop-blocked matmuls) -> power -> mel matmul -> log / affine.
# ----------------------------------------------------------------------------
def mel_kernel(main_ref, tail_ref, basis_ref, melT_ref, out_ref, slab_ref,
               *, hop, n_fft, n_seg):
    TM = out_ref.shape[1]
    n_rbins = basis_ref.shape[1] // 2
    tail_rows = tail_ref.shape[2]

    # Build the slab: rows [0, TM) from this chunk, rows [TM, TM+tail_rows)
    # from the head of the next chunk (covers frame overlap across the tile edge).
    slab_ref[pl.ds(0, TM), :] = main_ref[0, 0]
    slab_ref[pl.ds(TM, tail_rows), :] = tail_ref[0, 0]

    # Windowed rDFT over overlapping frames without materializing a 3.2x
    # duplicated frame matrix:
    #   y[i, :] = sum_q slab[i + q, :len_q] @ basis[q*hop : q*hop + len_q, :]
    y = None
    for q in range(n_seg):
        len_q = min(hop, n_fft - q * hop)
        part = jnp.dot(
            slab_ref[pl.ds(q, TM), pl.ds(0, len_q)],
            basis_ref[pl.ds(q * hop, len_q), :],
            preferred_element_type=jnp.float32,
        )
        y = part if y is None else y + part                    # (TM, 2*n_rbins)

    re = y[:, :n_rbins]
    im = y[:, n_rbins:]
    power = re * re + im * im                                  # |STFT|^2, Nyquist dropped
    mel = jnp.dot(power, melT_ref[...], preferred_element_type=jnp.float32)
    out_ref[0] = (jnp.log(mel + 1e-5) + 4.5) * 0.2             # log + affine (x0.2, not /5)


def augment_mel_stft(x, *, n_mels=64, sr=16000, win_length=200, hopsize=80,
                     n_fft=256, fmin=0.0, fmax=None, fmax_aug_range=2000,
                     frame_tile=256):
    """Eval-mode forward of AugmentMelSTFT. x: (B, T) float32 waveform ->
    (B, n_mels, 1 + T // hopsize) normalized log-mel spectrogram."""
    if fmax is None:
        fmax = sr // 2 - fmax_aug_range // 2

    B, T = x.shape
    hop = hopsize
    pad = n_fft // 2
    n_rbins = n_fft // 2  # Nyquist bin dropped: its mel column is 0 in the reference

    # ---- constant operands (window folded into the DFT basis; lane-dense mel) ----
    basis = jnp.asarray(fused_dft_basis(win_length, n_fft))           # (n_fft, 2*n_rbins)
    n_mels_pad = _cdiv(n_mels, 128) * 128                             # lane-dense output
    melT_np = np.zeros((n_rbins, n_mels_pad), np.float32)
    melT_np[:, :n_mels] = kaldi_mel_banks(n_mels, n_fft, sr, fmin, fmax).T
    melT = jnp.asarray(melT_np)                                       # (n_rbins, n_mels_pad)
    # NOTE: bf16 cast of basis/frames (2-3x MXU) deliberately not applied until
    # validated against the torch reference (log(mel+1e-5) amplifies error).

    # ---- frame geometry ----
    n_frames = 1 + T // hop                       # torch.stft, center=True
    TM = min(frame_tile, max(8, _cdiv(n_frames, 8) * 8))   # rows per MXU tile
    n_tiles = _cdiv(n_frames, TM)
    n_seg = _cdiv(n_fft, hop)                     # hop-blocks per frame
    tail_rows = max(8, _cdiv(n_seg - 1, 8) * 8)   # extra slab rows from next chunk

    # ---- waveform: reflect pad (center=True) + chunk into (TM, hop) slabs ----
    xp = jnp.pad(x.astype(jnp.float32), ((0, 0), (pad, pad)), mode="reflect")
    chunk = TM * hop
    n_extra = max(1, _cdiv(max(0, xp.shape[1] - n_tiles * chunk), chunk))
    total = (n_tiles + n_extra) * chunk
    xp = jnp.pad(xp, ((0, 0), (0, total - xp.shape[1])))
    xpr = xp.reshape(B, n_tiles + n_extra, TM, hop)
    main = xpr[:, :n_tiles]                                            # (B, n_tiles, TM, hop)
    tails = xpr[:, 1:n_tiles + 1, :tail_rows, :]                       # (B, n_tiles, tail_rows, hop)

    kernel = partial(mel_kernel, hop=hop, n_fft=n_fft, n_seg=n_seg)
    out = pl.pallas_call(
        kernel,
        out_shape=jax.ShapeDtypeStruct((B, n_tiles * TM, n_mels_pad), jnp.float32),
        grid=(B, n_tiles),
        in_specs=[
            pl.BlockSpec((1, 1, TM, hop), lambda b, t: (b, t, 0, 0)),
            pl.BlockSpec((1, 1, tail_rows, hop), lambda b, t: (b, t, 0, 0)),
            pl.BlockSpec((n_fft, 2 * n_rbins), lambda b, t: (0, 0)),   # resident constant
            pl.BlockSpec((n_rbins, n_mels_pad), lambda b, t: (0, 0)),  # resident constant
        ],
        out_specs=pl.BlockSpec((1, TM, n_mels_pad), lambda b, t: (b, t, 0)),
        scratch_shapes=[pltpu.VMEM((TM + tail_rows, hop), jnp.float32)],
        compiler_params=pltpu.CompilerParams(
            dimension_semantics=("parallel", "parallel")),
    )(main, tails, basis, melT)

    # crop row/lane padding; match PyTorch output layout (batch, n_mels, time)
    return jnp.transpose(out[:, :n_frames, :n_mels], (0, 2, 1))


# ----------------------------------------------------------------------------
# Pure-JAX reference (same math, frame gather + single matmuls) for validation.
# ----------------------------------------------------------------------------
def reference_mel(x, *, n_mels=64, sr=16000, win_length=200, hopsize=80,
                  n_fft=256, fmin=0.0, fmax=None, fmax_aug_range=2000):
    if fmax is None:
        fmax = sr // 2 - fmax_aug_range // 2
    B, T = x.shape
    pad = n_fft // 2
    n_bins = n_fft // 2 + 1
    window = jnp.asarray(hann_window_padded(win_length, n_fft))
    n = np.arange(n_fft, dtype=np.float64)[:, None]
    k = np.arange(n_bins, dtype=np.float64)[None, :]
    ang = 2.0 * np.pi * n * k / n_fft
    cos_m = jnp.asarray(np.cos(ang).astype(np.float32))
    sin_m = jnp.asarray((-np.sin(ang)).astype(np.float32))
    xp = jnp.pad(x.astype(jnp.float32), ((0, 0), (pad, pad)), mode="reflect")
    n_frames = 1 + T // hopsize
    idx = np.arange(n_frames)[:, None] * hopsize + np.arange(n_fft)[None, :]
    frames = xp[:, idx] * window[None, None, :]
    hi = jax.lax.Precision.HIGHEST
    re = jnp.einsum("bfn,nk->bfk", frames, cos_m, precision=hi)
    im = jnp.einsum("bfn,nk->bfk", frames, sin_m, precision=hi)
    power = re * re + im * im
    mel_basis = np.pad(kaldi_mel_banks(n_mels, n_fft, sr, fmin, fmax), ((0, 0), (0, 1)))
    mel = jnp.einsum("bfk,km->bfm", power, jnp.asarray(mel_basis.T), precision=hi)
    return jnp.transpose((jnp.log(mel + 1e-5) + 4.5) / 5.0, (0, 2, 1))


if __name__ == "__main__":
    key = jax.random.PRNGKey(0)
    B, T = 2, 1600
    x = jax.random.normal(key, (B, T), dtype=jnp.float32)

    mel = augment_mel_stft(x)                       # (2, 64, 21)
    jax.block_until_ready(mel)
    assert mel.shape == (2, 64, 1 + T // 80), mel.shape
    assert bool(jnp.all(jnp.isfinite(mel)))

    ref = reference_mel(x)
    err = float(jnp.max(jnp.abs(mel - ref)))
    assert err < 1e-2, f"max abs err vs jnp reference: {err}"
    # TODO(synk): training-time FrequencyMasking/TimeMasking and random fmin/fmax
    # augmentation are stochastic torch-side ops; eval-mode path implemented only.
    print("KERNEL_OK")
</pallas_src>

<mosaic_0001>
module attributes {stable_mosaic.version = 11 : i64} {
  func.func @mel_kernel(%arg0: i32, %arg1: i32, %arg2: memref<1x1x24x80xf32, #tpu.memory_space<vmem>>, %arg3: memref<1x1x8x80xf32, #tpu.memory_space<vmem>>, %arg4: memref<256x256xf32, #tpu.memory_space<vmem>>, %arg5: memref<128x128xf32, #tpu.memory_space<vmem>>, %arg6: memref<1x24x128xf32, #tpu.memory_space<vmem>>, %arg7: memref<32x80xf32, #tpu.memory_space<vmem>>) attributes {dimension_semantics = [#tpu.dimension_semantics<parallel>, #tpu.dimension_semantics<parallel>], iteration_bounds = array<i64: 2, 1>, scalar_prefetch = 0 : i64, scratch_operands = 1 : i64, tpu.core_type = #tpu.core_type<tc>, window_params = [{transform_indices = @transform_0, window_bounds = array<i64: 1, 1, 24, 80>}, {transform_indices = @transform_1, window_bounds = array<i64: 1, 1, 8, 80>}, {pipeline_mode = #tpu.pipeline_mode<synchronous>, transform_indices = @transform_2, window_bounds = array<i64: 256, 256>}, {pipeline_mode = #tpu.pipeline_mode<synchronous>, transform_indices = @transform_3, window_bounds = array<i64: 128, 128>}, {transform_indices = @transform_4, window_bounds = array<i64: 1, 24, 128>}]} {
    %c0 = arith.constant 0 : index
    %c0_0 = arith.constant 0 : index
    %c0_1 = arith.constant 0 : index
    %c0_2 = arith.constant 0 : index
    %0 = vector.load %arg2[%c0, %c0_0, %c0_1, %c0_2] : memref<1x1x24x80xf32, #tpu.memory_space<vmem>>, vector<1x1x24x80xf32>
    %1 = vector.shape_cast %0 : vector<1x1x24x80xf32> to vector<24x80xf32>
    %c0_3 = arith.constant 0 : index
    %c0_4 = arith.constant 0 : index
    %2 = vector.load %arg7[%c0_3, %c0_4] : memref<32x80xf32, #tpu.memory_space<vmem>>, vector<24x80xf32>
    tpu.vector_store %arg7[%c0_3, %c0_4], %1 {strides = array<i32>} : memref<32x80xf32, #tpu.memory_space<vmem>>, vector<24x80xf32>,
    %c0_5 = arith.constant 0 : index
    %c0_6 = arith.constant 0 : index
    %c0_7 = arith.constant 0 : index
    %c0_8 = arith.constant 0 : index
    %3 = vector.load %arg3[%c0_5, %c0_6, %c0_7, %c0_8] : memref<1x1x8x80xf32, #tpu.memory_space<vmem>>, vector<1x1x8x80xf32>
    %4 = vector.shape_cast %3 : vector<1x1x8x80xf32> to vector<8x80xf32>
    %c24 = arith.constant 24 : index
    %c0_9 = arith.constant 0 : index
    %5 = vector.load %arg7[%c24, %c0_9] : memref<32x80xf32, #tpu.memory_space<vmem>>, vector<8x80xf32>
    tpu.vector_store %arg7[%c24, %c0_9], %4 {strides = array<i32>} : memref<32x80xf32, #tpu.memory_space<vmem>>, vector<8x80xf32>,
    %c0_10 = arith.constant 0 : index
    %c0_11 = arith.constant 0 : index
    %6 = vector.load %arg7[%c0_10, %c0_11] : memref<32x80xf32, #tpu.memory_space<vmem>>, vector<24x80xf32>
    %c0_12 = arith.constant 0 : index
    %c0_13 = arith.constant 0 : index
    %7 = vector.load %arg4[%c0_12, %c0_13] : memref<256x256xf32, #tpu.memory_space<vmem>>, vector<80x256xf32>
    %cst = arith.constant dense<0.000000e+00> : vector<24x256xf32>
    %8 = tpu.matmul %6, %7, %cst {dimension_numbers = #tpu.dot_dimension_numbers<[1], [0], [0], [1], [0, 0, 1, 1], [], []>} : vector<24x80xf32>, vector<80x256xf32>, vector<24x256xf32> -> vector<24x256xf32>
    %c1 = arith.constant 1 : index
    %c0_14 = arith.constant 0 : index
    %9 = vector.load %arg7[%c1, %c0_14] : memref<32x80xf32, #tpu.memory_space<vmem>>, vector<24x80xf32>
    %c80 = arith.constant 80 : index
    %c0_15 = arith.constant 0 : index
    %10 = vector.load %arg4[%c80, %c0_15] : memref<256x256xf32, #tpu.memory_space<vmem>>, vector<80x256xf32>
    %cst_16 = arith.constant dense<0.000000e+00> : vector<24x256xf32>
    %11 = tpu.matmul %9, %10, %cst_16 {dimension_numbers = #tpu.dot_dimension_numbers<[1], [0], [0], [1], [0, 0, 1, 1], [], []>} : vector<24x80xf32>, vector<80x256xf32>, vector<24x256xf32> -> vector<24x256xf32>
    %12 = arith.addf %8, %11 : vector<24x256xf32>
    %c2 = arith.constant 2 : index
    %c0_17 = arith.constant 0 : index
    %13 = vector.load %arg7[%c2, %c0_17] : memref<32x80xf32, #tpu.memory_space<vmem>>, vector<24x80xf32>
    %c160 = arith.constant 160 : index
    %c0_18 = arith.constant 0 : index
    %14 = vector.load %arg4[%c160, %c0_18] : memref<256x256xf32, #tpu.memory_space<vmem>>, vector<80x256xf32>
    %cst_19 = arith.constant dense<0.000000e+00> : vector<24x256xf32>
    %15 = tpu.matmul %13, %14, %cst_19 {dimension_numbers = #tpu.dot_dimension_numbers<[1], [0], [0], [1], [0, 0, 1, 1], [], []>} : vector<24x80xf32>, vector<80x256xf32>, vector<24x256xf32> -> vector<24x256xf32>
    %16 = arith.addf %12, %15 : vector<24x256xf32>
    %c3 = arith.constant 3 : index
    %c0_20 = arith.constant 0 : index
    %17 = vector.load %arg7[%c3, %c0_20] : memref<32x80xf32, #tpu.memory_space<vmem>>, vector<24x16xf32>
    %c240 = arith.constant 240 : index
    %c0_21 = arith.constant 0 : index
    %18 = vector.load %arg4[%c240, %c0_21] : memref<256x256xf32, #tpu.memory_space<vmem>>, vector<16x256xf32>
    %cst_22 = arith.constant dense<0.000000e+00> : vector<24x256xf32>
    %19 = tpu.matmul %17, %18, %cst_22 {dimension_numbers = #tpu.dot_dimension_numbers<[1], [0], [0], [1], [0, 0, 1, 1], [], []>} : vector<24x16xf32>, vector<16x256xf32>, vector<24x256xf32> -> vector<24x256xf32>
    %20 = arith.addf %16, %19 : vector<24x256xf32>
    %21 = vector.extract_strided_slice %20 {offsets = [0, 0], sizes = [24, 128], strides = [1, 1]} : vector<24x256xf32> to vector<24x128xf32>
    %22 = vector.extract_strided_slice %20 {offsets = [0, 128], sizes = [24, 128], strides = [1, 1]} : vector<24x256xf32> to vector<24x128xf32>
    %23 = arith.mulf %21, %21 : vector<24x128xf32>
    %24 = arith.mulf %22, %22 : vector<24x128xf32>
    %25 = arith.addf %23, %24 : vector<24x128xf32>
    %c0_23 = arith.constant 0 : index
    %c0_24 = arith.constant 0 : index
    %26 = vector.load %arg5[%c0_23, %c0_24] : memref<128x128xf32, #tpu.memory_space<vmem>>, vector<128x128xf32>
    %cst_25 = arith.constant dense<0.000000e+00> : vector<24x128xf32>
    %27 = tpu.matmul %25, %26, %cst_25 {dimension_numbers = #tpu.dot_dimension_numbers<[1], [0], [0], [1], [0, 0, 1, 1], [], []>} : vector<24x128xf32>, vector<128x128xf32>, vector<24x128xf32> -> vector<24x128xf32>
    %cst_26 = arith.constant 9.99999974E-6 : f32
    %28 = vector.broadcast %cst_26 : f32 to vector<24x128xf32>
    %29 = arith.addf %27, %28 : vector<24x128xf32>
    %30 = math.log %29 : vector<24x128xf32>
    %cst_27 = arith.constant 4.500000e+00 : f32
    %31 = vector.broadcast %cst_27 : f32 to vector<24x128xf32>
    %32 = arith.addf %30, %31 : vector<24x128xf32>
    %cst_28 = arith.constant 2.000000e-01 : f32
    %33 = vector.broadcast %cst_28 : f32 to vector<24x128xf32>
    %34 = arith.mulf %32, %33 : vector<24x128xf32>
    %c0_29 = arith.constant 0 : index
    %c0_30 = arith.constant 0 : index
    %c0_31 = arith.constant 0 : index
    %35 = vector.load %arg6[%c0_29, %c0_30, %c0_31] : memref<1x24x128xf32, #tpu.memory_space<vmem>>, vector<1x24x128xf32>
    %36 = vector.shape_cast %35 : vector<1x24x128xf32> to vector<24x128xf32>
    %37 = vector.shape_cast %34 : vector<24x128xf32> to vector<1x24x128xf32>
    tpu.vector_store %arg6[%c0_29, %c0_30, %c0_31], %37 {strides = array<i32>} : memref<1x24x128xf32, #tpu.memory_space<vmem>>, vector<1x24x128xf32>,
    return
  }
  func.func @transform_0(%arg0: i32, %arg1: i32) -> (i32, i32, i32, i32) {
    %c0_i32 = arith.constant 0 : i32
    %c0_i32_0 = arith.constant 0 : i32
    %c0_i32_1 = arith.constant 0 : i32
    return %arg0, %arg1, %c0_i32, %c0_i32_0 : i32, i32, i32, i32
  }
  func.func @transform_1(%arg0: i32, %arg1: i32) -> (i32, i32, i32, i32) {
    %c0_i32 = arith.constant 0 : i32
    %c0_i32_0 = arith.constant 0 : i32
    %c0_i32_1 = arith.constant 0 : i32
    return %arg0, %arg1, %c0_i32, %c0_i32_0 : i32, i32, i32, i32
  }
  func.func @transform_2(%arg0: i32, %arg1: i32) -> (i32, i32) {
    %c0_i32 = arith.constant 0 : i32
    %c0_i32_0 = arith.constant 0 : i32
    %c0_i32_1 = arith.constant 0 : i32
    return %c0_i32, %c0_i32_0 : i32, i32
  }
  func.func @transform_3(%arg0: i32, %arg1: i32) -> (i32, i32) {
    %c0_i32 = arith.constant 0 : i32
    %c0_i32_0 = arith.constant 0 : i32
    %c0_i32_1 = arith.constant 0 : i32
    return %c0_i32, %c0_i32_0 : i32, i32
  }
  func.func @transform_4(%arg0: i32, %arg1: i32) -> (i32, i32, i32) {
    %c0_i32 = arith.constant 0 : i32
    %c0_i32_0 = arith.constant 0 : i32
    return %arg0, %arg1, %c0_i32 : i32, i32, i32
  }
}

</mosaic_0001>

<bundles_post_ra>
// kernel: tpu_custom_call.1
= control target key start
LH: loop header
LB: loop body
LE: loop exit
PB: predicated region body
PF: predicated region fallthrough
CT: control target
= control target key end

     0   :  { %s1934_s0 = inlined_call_operand.hbm [shape: f32[2,1,24,80], index: 0, kind: input, shape index: {}]   ;;  %s1935_s1 = inlined_call_operand.hbm [shape: f32[2,1,8,80], index: 1, kind: input, shape index: {}]   ;;  %s1936_s2 = inlined_call_operand.hbm [shape: f32[256,256], index: 2, kind: input, shape index: {}]   ;;  %s1937_s3 = inlined_call_operand.hbm [shape: f32[128,128], index: 3, kind: input, shape index: {}]   ;;  %s1938_s4 = inlined_call_operand.hbm [shape: f32[2,24,128], index: 4, kind: output, shape index: {}]  }
   0x1   :  { %1945 = sst [smem:[#allocation18_spill]] %s1934_s0 }
   0x2   :  { %1946 = sst [smem:[#allocation19_spill]] %s1936_s2 }
   0x3   :  { %1947 = sst [smem:[#allocation20_spill]] %s1937_s3 }
   0x4   :  { %9 = vsyncpa [#allocation4], 0 }
   0x5   :  { %11 = vsyncpa [#allocation4 + $0x1], 0 }
   0x6   :  { %12 = vsyncpa [#allocation7], 0 }
   0x7   :  { %14 = vsyncpa [#allocation7 + $0x1], 0 }
   0x8   :  { %15 = vsyncpa [#allocation10], 0 }
   0x9   :  { %16 = vsyncpa [#allocation5], 0 }
   0xa   :  { %18 = vsyncpa [#allocation5 + $0x1], 0  ;;  %s1588_s15 = smov 0   ;;  %s1590_s16 = smov 0  }
   0xb   :  { %s1592_s17 = smov 0   ;;  %s1594_s18 = smov 0  }
   0xc   :  { %s1596_s19 = smov 0   ;;  %s1598_s20 = smov 0  }
   0xd LB: > { %s1619_s21 = sadd.s32 4294967295, %s1547_s20   ;;  %s1037_s22 = sadd.s32 4294967294, %s1547_s20   ;;  %s1547_s20 = sphi %s1598_s20, %s24_s20   ;;  %s1543_s19 = sphi %s1596_s19, %s1974_s19   ;;  %s1539_s18 = sphi %s1594_s18, %s1973_s18   ;;  %s1535_s17 = sphi %s1592_s17, %s1972_s17   ;;  %s1531_s16 = sphi %s1590_s16, %s1971_s16   ;;  %s1527_s15 = sphi %s1588_s15, %s1970_s15  }
   0xe   : > { %p58_p0 = scmp.ne.s32.totalorder %s1531_s16, %s1527_s15  ;;  %p1939_p1 = scmp.eq.s32.totalorder %s1619_s21, 0 }
   0xf   : > { %p160_p3 = scmp.eq.s32.totalorder %s1037_s22, 1  ;;  %p1038_p5 = scmp.ge.s32.totalorder %s1547_s20, 1 }
  0x10   : > { %p1628_p4 = por %p1939_p1, %p58_p0  ;;  %p167_p7 = scmp.lt.s32.totalorder %s1547_s20, 3 }
  0x11   : > { %p1633_p6 = por %p160_p3, %p58_p0  ;;  %s1549_s26 = smov [#allocation8]  }
  0x12   : > { %s1948_s23 = scalar_select %p1628_p4, 1, 0 }
  0x13   : > { %s1949_s24 = scalar_select %p1633_p6, 1, 0 }
  0x14   : > { %p1638_p8 = pnand %p1038_p5, %p167_p7  ;;  %s179_s27 = sshll.u32 %s1549_s26, 4  ;;  %s1642_s27 = int_to_ptr.vmem [resolvable:$true] %s179_s27 }
  0x15   : > { %s1550_s29 = smov [#allocation9]   ;;  %s1952_s2 = sld [smem:[#allocation19_spill]] }
  0x16   : > { %s1950_s25 = scalar_select %p1638_p8, 1, 0 }
  0x17   : > { %p1248_p9 = pneg %p1638_p8  ;;  %s192_s30 = sshll.u32 %s1550_s29, 4  ;;  %s1653_s30 = int_to_ptr.vmem [resolvable:$true] %s192_s30 }
  0x19   : > { %p1649_p11 = pnand %p1248_p9, %p1939_p1 }
  0x1b   : > { %s1337_s7 = scalar_lea.hbm %s1952_s2, 8192  ;;  %p1339_p13 = pneg %p1649_p11 }
  0x1c   : > { %p1338_p12 = scmp.ne.s32.totalorder %s1952_s2, %s1337_s7  ;;  %p1344_p5 = scmp.lt.u32.totalorder %s1337_s7, %s1952_s2 }
  0x1e   : > { %p1340_p0 = pnand %p1339_p13, %p1338_p12 }
  0x20   : > { %p1341_p3 = pneg %p1340_p0 }
  0x22   : > { %p1346_p7 = pnand %p1344_p5, %p1341_p3 }
  0x24   : > { %1349 = shalt.err (!%p1346_p7)
}
  0x25   : > { %s1350_s12 = scalar_lea.vmem %s1642_s27, 8192  ;;  %p1358_p2 = scmp.lt.s32.totalorder %s1642_s27, %s1642_s27 }
  0x26   : > { %p1351_p9 = scmp.ne.s32.totalorder %s1642_s27, %s1350_s12  ;;  %p1359_p12 = scmp.lt.s32.totalorder %s1350_s12, %s1350_s12 }
  0x28   : > { %p1353_p10 = pnand %p1351_p9, %p1339_p13  ;;  %p1360_p0 = por %p1359_p12, %p1358_p2 }
  0x2a   : > { %p1354_p1 = pneg %p1353_p10 }
  0x2c   : > { %p1361_p6 = pnand %p1360_p0, %p1354_p1 }
  0x2e   : > { %1364 = shalt.err (!%p1361_p6)
}
  0x2f   : > { %s1551_s13 = smov 256   ;;  %s1552_s14 = smov 16  }
  0x30   : > { %1251 = dma.hbm_to_vmem [thread:$0]  (!%p1649_p11), %s1952_s2, 8192, %s1642_s27, [#allocation7], %s1551_s13, %s1551_s13, %s1552_s14  }
  0x31   : > { %s1953_s3 = sld [smem:[#allocation20_spill]] }
  0x37   : > { %s1365_s6 = scalar_lea.hbm %s1953_s3, 2048 }
  0x38   : > { %p1366_p2 = scmp.ne.s32.totalorder %s1953_s3, %s1365_s6  ;;  %p1372_p10 = scmp.lt.u32.totalorder %s1365_s6, %s1953_s3 }
  0x3a   : > { %p1368_p1 = pnand %p1366_p2, %p1339_p13 }
  0x3c   : > { %p1369_p6 = pneg %p1368_p1 }
  0x3e   : > { %p1374_p3 = pnand %p1372_p10, %p1369_p6 }
  0x40   : > { %1377 = shalt.err (!%p1374_p3)
}
  0x41   : > { %s1378_s27 = scalar_lea.vmem %s1653_s30, 2048  ;;  %p1386_p12 = scmp.lt.s32.totalorder %s1653_s30, %s1653_s30 }
  0x42   : > { %p1379_p5 = scmp.ne.s32.totalorder %s1653_s30, %s1378_s27  ;;  %p1387_p0 = scmp.lt.s32.totalorder %s1378_s27, %s1378_s27 }
  0x44   : > { %p1381_p7 = pnand %p1379_p5, %p1339_p13  ;;  %p1388_p2 = por %p1387_p0, %p1386_p12 }
  0x46   : > { %p1382_p9 = pneg %p1381_p7 }
  0x48   : > { %p1389_p1 = pnand %p1388_p2, %p1382_p9 }
  0x4a   : > { %1392 = shalt.err (!%p1389_p1)
}
  0x4b   : > { %s1940_s11 = smov 128   ;;  %s1554_s12 = smov 8  }
  0x4c   : > { %1254 = dma.hbm_to_vmem [thread:$0]  (!%p1649_p11), %s1953_s3, 2048, %s1653_s30, [#allocation10], %s1940_s11, %s1940_s11, %s1554_s12  }
  0x4d   : > { %s36_s22 = sadd.s32 1, %s1543_s19  ;;  %s45_s26 = sadd.s32 1, %s1535_s17 }
  0x4e   : > { %p38_p13 = scmp.ge.s32.totalorder %s36_s22, 2  ;;  %p52_p6 = scmp.ne.s32.totalorder %s1535_s17, %s1531_s16 }
  0x4f   : > { %p53_p10 = scmp.eq.s32.totalorder %s1547_s20, 0  ;;  %p1268_p3 = scmp.lt.s32.totalorder %s1547_s20, 2 }
  0x50   : > { %s1976_s22 = smov (%p38_p13, %s36_s22), 0  ;;  %p1955_p7 = scmp.eq.s32.totalorder %s1619_s21, 1 }
  0x51   : > { %1954 = sst [smem:[#allocation17_spill]] %s1976_s22  ;;  %p54_p5 = por %p53_p10, %p52_p6 }
  0x52   : > { %p1720_p9 = por %p1955_p7, %p52_p6  ;;  %s40_s29 = ssub.s32 %s1543_s19, %s1976_s22 }
  0x53   : > { %s1727_s5 = sand.u32 1, %s1535_s17   ;;  %p43_p11 = scmp.eq.s32.totalorder %s40_s29, 0 }
  0x54   : > { %s1956_s28 = scalar_select %p1720_p9, 1, 0 }
  0x55   : > { %s1230_s30 = smul.u32 24, %s1727_s5  ;;  %p1730_p12 = pnand %p1268_p3, %p54_p5 }
  0x56   : > { %s1735_s7 = scalar_select %p43_p11, %s1535_s17, %s45_s26  }
  0x57   : > { %s1231_s8 = smul.u32 384, %s1543_s19  ;;  %s210_s9 = scalar_lea.vmem [#allocation3], %s1230_s30 }
  0x58   : > { %s219_s10 = sshll.u32 %s210_s9, 4  ;;  %s1958_s0 = sld [smem:[#allocation18_spill]]  ;;  %s1743_s10 = int_to_ptr.vmem [resolvable:$true] %s219_s10 }
  0x59   : > { %s207_s29 = scalar_lea.sflag [#allocation4], %s1727_s5  ;;  %p1395_p2 = pneg %p1730_p12 }
  0x5e   : > { %s1741_s14 = scalar_lea.hbm %s1958_s0, %s1231_s8  ;;  %s1398_s8 = scalar_lea.hbm %s1958_s0, 768 }
  0x5f   : > { %s1393_s11 = scalar_lea.hbm %s1741_s14, 384  ;;  %p1399_p6 = scmp.lt.u32.totalorder %s1741_s14, %s1958_s0 }
  0x60   : > { %p1394_p0 = scmp.ne.s32.totalorder %s1741_s14, %s1393_s11  ;;  %p1400_p10 = scmp.lt.u32.totalorder %s1398_s8, %s1393_s11 }
  0x61   : > { %p1402_p5 = scmp.lt.u32.totalorder %s1393_s11, %s1741_s14 }
  0x62   : > { %p1396_p1 = pnand %p1395_p2, %p1394_p0  ;;  %p1401_p3 = por %p1400_p10, %p1399_p6 }
  0x64   : > { %p1397_p13 = pneg %p1396_p1  ;;  %p1403_p7 = por %p1402_p5, %p1401_p3 }
  0x66   : > { %p1404_p11 = pnand %p1403_p7, %p1397_p13 }
  0x68   : > { %1407 = shalt.err (!%p1404_p11)
}
  0x69   : > { %s1408_s13 = scalar_lea.vmem %s1743_s10, 384  ;;  %s1555_s26 = smov [#allocation3]  }
  0x6a   : > { %p1409_p0 = scmp.ne.s32.totalorder %s1743_s10, %s1408_s13  ;;  %s1413_s30 = sshll.u32 %s1555_s26, 4  ;;  %s1414_s30 = int_to_ptr.vmem [resolvable:$false] %s1413_s30 }
  0x6b   : > { %s1415_s9 = scalar_lea.vmem %s1414_s30, 768  ;;  %p1416_p4 = scmp.lt.s32.totalorder %s1743_s10, %s1414_s30 }
  0x6c   : > { %p1411_p1 = pnand %p1409_p0, %p1395_p2  ;;  %p1417_p6 = scmp.lt.s32.totalorder %s1415_s9, %s1408_s13 }
  0x6e   : > { %p1412_p9 = pneg %p1411_p1  ;;  %p1418_p10 = por %p1417_p6, %p1416_p4 }
  0x70   : > { %p1419_p3 = pnand %p1418_p10, %p1412_p9 }
  0x72   : > { %1422 = shalt.err (!%p1419_p3)
}
  0x73   : > { %s1959_s11 = smov 128   ;;  %s229_s8 = sand.u32 1, %s1547_s20  }
  0x74   : > { %1258 = dma.hbm_to_vmem [thread:$0]  (!%p1730_p12), %s1741_s14, 384, %s1743_s10, %s207_s29, %s1959_s11, %s1959_s11, %s1554_s12  }
  0x75   : > { %s1043_s27 = sshll.u32 %s1727_s5, 3  ;;  %s1044_s13 = sshll.u32 %s1543_s19, 7 }
  0x76   : > { %s233_s26 = scalar_lea.vmem [#allocation6], %s1043_s27  ;;  %s1782_s2 = scalar_lea.hbm %s1935_s1, %s1044_s13 }
  0x77   : > { %s241_s30 = sshll.u32 %s233_s26, 4  ;;  %s230_s3 = scalar_lea.sflag [#allocation7], %s229_s8  ;;  %s242_s30 = int_to_ptr.vmem [resolvable:$true] %s241_s30 }
  0x78   : > { %s1423_s22 = scalar_lea.hbm %s1782_s2, 128  ;;  %s1428_s10 = scalar_lea.hbm %s1935_s1, 256 }
  0x79   : > { %p1424_p4 = scmp.ne.s32.totalorder %s1782_s2, %s1423_s22  ;;  %p1429_p5 = scmp.lt.u32.totalorder %s1782_s2, %s1935_s1 }
  0x7a   : > { %p1430_p7 = scmp.lt.u32.totalorder %s1428_s10, %s1423_s22  ;;  %p1432_p0 = scmp.lt.u32.totalorder %s1423_s22, %s1782_s2 }
  0x7b   : > { %p1426_p9 = pnand %p1424_p4, %p1395_p2 }
  0x7c   : > { %p1431_p11 = por %p1430_p7, %p1429_p5 }
  0x7d   : > { %p1427_p13 = pneg %p1426_p9 }
  0x7e   : > { %p1433_p1 = por %p1432_p0, %p1431_p11 }
  0x80   : > { %p1434_p6 = pnand %p1433_p1, %p1427_p13 }
  0x82   : > { %1437 = shalt.err (!%p1434_p6)
}
  0x83   : > { %s1438_s29 = scalar_lea.vmem %s242_s30, 128  ;;  %s1556_s11 = smov [#allocation6]  }
  0x84   : > { %p1439_p10 = scmp.ne.s32.totalorder %s242_s30, %s1438_s29  ;;  %s1443_s8 = sshll.u32 %s1556_s11, 4  ;;  %s1444_s8 = int_to_ptr.vmem [resolvable:$false] %s1443_s8 }
  0x85   : > { %s1445_s27 = scalar_lea.vmem %s1444_s8, 256  ;;  %p1446_p9 = scmp.lt.s32.totalorder %s242_s30, %s1444_s8 }
  0x86   : > { %p1441_p3 = pnand %p1439_p10, %p1395_p2  ;;  %p1447_p8 = scmp.lt.s32.totalorder %s1445_s27, %s1438_s29 }
  0x88   : > { %p1442_p4 = pneg %p1441_p3  ;;  %p1448_p5 = por %p1447_p8, %p1446_p9 }
  0x8a   : > { %p1449_p7 = pnand %p1448_p5, %p1442_p4 }
  0x8c   : > { %1452 = shalt.err (!%p1449_p7)
}
  0x8d   : > { %1261 = dma.hbm_to_vmem [thread:$0]  (!%p1730_p12), %s1782_s2, 128, %s242_s30, %s230_s3  }
  0x8e   : > { %p1960_p13 = scmp.ne.s32.totalorder %s1950_s25, 0 }
  0x8f   : > { %s1806_s22 = sand.u32 (!%p1960_p13), 1, %s1531_s16   ;;  %p1961_p8 = scmp.ne.s32.totalorder (!%p1960_p13), %s1948_s23, 0 }
  0x90   : > { %250 = sbr.rel (%p1960_p13) target bundleno = 690 (0x2b2), region = 36  ;;  %s253_s26 = scalar_lea.sflag (!%p1960_p13), [#allocation4], %s1806_s22 }
  0x91   : > { %s1232_s13 = smul.u32 (!%p1960_p13), 24, %s1806_s22 }
  0x93   : > { %s1812_s9 = scalar_lea.vmem (!%p1960_p13), [#allocation3], %s1232_s13 }
  0x97   : > { %1506 = dma.done.wait (%p1961_p8), %s253_s26, 384  }
  0x98   : > { %1508 = vsyncadd (%p1961_p8), %s253_s26, 4294966912  ;;  %s261_s2 = sand.u32 1, %s1619_s21   ;;  %s1046_s3 = sshll.u32 %s1806_s22, 3 }
  0x99   : > { %s262_s25 = scalar_lea.sflag [#allocation7], %s261_s2  ;;  %s1820_s6 = scalar_lea.vmem [#allocation6], %s1046_s3 }
  0x9a   : > { %1510 = dma.done.wait (%p1961_p8), %s262_s25, 128  }
  0x9b   : > { %1512 = vsyncadd (%p1961_p8), %s262_s25, 4294967168  ;;  %p1962_p12 = scmp.eq.s32.totalorder %s1619_s21, 0 }
  0x9d   : > { %1514 = dma.done.wait (%p1962_p12), [#allocation7], 8192   ;;  %p1963_p2 = pmov %p1962_p12 }
  0x9f   : > { %1516 = vsyncadd (%p1963_p2), [#allocation7], 4294959104  ;;  %p1964_p11 = pmov %p1963_p2 }
  0xa0   : > { %p1965_p0 = pmov %p1963_p2 }
  0xa1   : > { %1518 = dma.done.wait (%p1964_p11), [#allocation10], 2048  }
  0xa2   : > { %1520 = vsyncadd (%p1965_p0), [#allocation10], 4294965248  ;;  %v1557_v0 = vmov 0.0   ;;  %v317_v1 = vld [vmem:[#allocation8 + $0x8] sm:$0xff]  ;;  %v319_v2 = vld [vmem:[#allocation8 + $0x18] sm:$0xff]  ;;  %vm307_vm0 = vcmask 654336  }
  0xa3   : > { %524 = vmatprep.mubr.f32.mxu0 %v1557_v0  ;;  %432 = vmatprep.mubr.f32.mxu1 %v1557_v0  ;;  %v316_v3 = vld [vmem:[#allocation8] sm:$0xff]  ;;  %v1144_v4 = vpack.c.bf16 %v319_v2, %v317_v1  ;;  %v318_v5 = vld [vmem:[#allocation8 + $0x10] sm:$0xff]  ;;  %v321_v6 = vld [vmem:[#allocation8 + $0x28] sm:$0xff]  ;;  %vm671_vm1 = vcmask 130048   ;;  %vm1559_vm2 = vmmov 0   ;;  %s302_s21 = scalar_lea.vmem [#allocation11], %s1232_s13 }
  0xa4   : > { %v323_v7 = vld [vmem:[#allocation8 + $0x38] sm:$0xff]  ;;  %v1146_v8 = vpack.c.bf16 %v318_v5, %v316_v3  ;;  %v320_v10 = vld [vmem:[#allocation8 + $0x20] sm:$0xff]  ;;  %v322_v11 = vld [vmem:[#allocation8 + $0x30] sm:$0xff]  ;;  %s906_s23 = sshll.u32 %s302_s21, 4  ;;  %s1233_s30 = smul.u32 384, %s1539_s18  ;;  %s1880_s23 = int_to_ptr.vmem [resolvable:$true] %s906_s23 }
  0xa5   : > { %v1148_v9 = vpack.c.bf16 %v323_v7, %v321_v6  ;;  %v325_v12 = vld [vmem:[#allocation8 + $0x48] sm:$0xff]  ;;  %1145 = vmatprep.subr.bf16.mxu0 %v1144_v4  ;;  %v327_v13 = vld [vmem:[#allocation8 + $0x58] sm:$0xff]  ;;  %v1150_v14 = vpack.c.bf16 %v322_v11, %v320_v10  ;;  %v324_v16 = vld [vmem:[#allocation8 + $0x40] sm:$0xff]  ;;  %s891_s14 = scalar_lea.sflag [#allocation5], %s1806_s22  ;;  %s1453_s0 = scalar_lea.vmem %s1880_s23, 384 }
  0xa6   : > { %1147 = vmatpush1.bf16.msra.mxu0 %v1146_v8  ;;  %v1152_v15 = vpack.c.bf16 %v327_v13, %v325_v12  ;;  %v326_v17 = vld [vmem:[#allocation8 + $0x50] sm:$0xff]  ;;  %v329_v18 = vld [vmem:[#allocation8 + $0x68] sm:$0xff]  ;;  %v331_v19 = vld [vmem:[#allocation8 + $0x78] sm:$0xff]  ;;  %s1885_s10 = scalar_lea.hbm %s1938_s4, %s1233_s30  ;;  %p1454_p1 = scmp.ne.s32.totalorder %s1880_s23, %s1453_s0 }
  0xa7   : > { %1149 = vmatprep.subr.bf16.mxu0 %v1148_v9  ;;  %v304_v20 = vld [vmem:[%s1812_s9] sm:$0xff]  ;;  %v1154_v21 = vpack.c.bf16 %v326_v17, %v324_v16  ;;  %v1156_v22 = vpack.c.bf16 %v331_v19, %v329_v18  ;;  %v330_v24 = vld [vmem:[#allocation8 + $0x70] sm:$0xff]  ;;  %v333_v25 = vld [vmem:[#allocation8 + $0x88] sm:$0xff]  ;;  %p1966_p6 = scmp.ne.s32.totalorder %s1956_s28, 0  ;;  %s1560_s18 = smov [#allocation11]  }
  0xa8   : > { %308 = vst.msk [vmem:[#allocation2] sm:$0xff] %vm307_vm0, %v304_v20  ;;  %v328_v23 = vld [vmem:[#allocation8 + $0x60] sm:$0xff]  ;;  %v335_v26 = vld [vmem:[#allocation8 + $0x98] sm:$0xff]  ;;  %v340_v27 = vld [vmem:[#allocation8 + $0xa8] sm:$0xff]  ;;  %s1457_s29 = sshll.u32 %s1560_s18, 4  ;;  %s1458_s29 = int_to_ptr.vmem [resolvable:$false] %s1457_s29 }
  0xa9   : > { %v342_v28 = vld [vmem:[#allocation8 + $0xb8] sm:$0xff]  ;;  %v305_v29 = vld [vmem:[%s1812_s9 + $0x8] sm:$0xff]  ;;  %v1158_v30 = vpack.c.bf16 %v330_v24, %v328_v23  ;;  %v334_v32 = vld [vmem:[#allocation8 + $0x90] sm:$0xff]  ;;  %v1160_v35 = vpack.c.bf16 %v335_v26, %v333_v25  ;;  %p1455_p10 = pnand %p1454_p1, %p1966_p6  ;;  %s1459_s11 = scalar_lea.vmem %s1458_s29, 768 }
  0xaa   : > { %1151 = vmatpush1.bf16.msra.mxu0 %v1150_v14  ;;  %v332_v31 = vld [vmem:[#allocation8 + $0x80] sm:$0xff]  ;;  %v1124_v33 = vpack.c.bf16 %v342_v28, %v340_v27  ;;  %309 = vst.msk [vmem:[#allocation2 + $0x8] sm:$0xff] %vm307_vm0, %v305_v29  ;;  %v547_v36 = vld [vmem:[#allocation8 + $0x148] sm:$0xff]  ;;  %v549_v37 = vld [vmem:[#allocation8 + $0x158] sm:$0xff]  ;;  %p1460_p4 = scmp.lt.s32.totalorder %s1880_s23, %s1458_s29  ;;  %p1461_p9 = scmp.lt.s32.totalorder %s1459_s11, %s1453_s0 }
  0xab   : > { %1153 = vmatprep.subr.bf16.mxu0 %v1152_v15  ;;  %v339_v34 = vld [vmem:[#allocation8 + $0xa0] sm:$0xff]  ;;  %v341_v38 = vld [vmem:[#allocation8 + $0xb0] sm:$0xff]  ;;  %v344_v40 = vld [vmem:[#allocation8 + $0xc8] sm:$0xff]  ;;  %v1162_v44 = vpack.c.bf16 %v334_v32, %v332_v31  ;;  %v1164_v48 = vpack.c.bf16 %v549_v37, %v547_v36  ;;  %p1456_p3 = pneg %p1455_p10 }
  0xac   : > { %1125 = vmatprep.subr.bf16.mxu1 %v1124_v33  ;;  %v1126_v39 = vpack.c.bf16 %v341_v38, %v339_v34  ;;  %v346_v41 = vld [vmem:[#allocation8 + $0xd8] sm:$0xff]  ;;  %v306_v42 = vld [vmem:[%s1812_s9 + $0x10] sm:$0xff]  ;;  %v546_v45 = vld [vmem:[#allocation8 + $0x140] sm:$0xff]  ;;  %p1462_p5 = por %p1461_p9, %p1460_p4 }
  0xad   : > { %v1128_v43 = vpack.c.bf16 %v346_v41, %v344_v40  ;;  %310 = vst.msk [vmem:[#allocation2 + $0x10] sm:$0xff] %vm307_vm0, %v306_v42  ;;  %v343_v46 = vld [vmem:[#allocation8 + $0xc0] sm:$0xff]  ;;  %v345_v47 = vld [vmem:[#allocation8 + $0xd0] sm:$0xff]  ;;  %v348_v51 = vld [vmem:[#allocation8 + $0xe8] sm:$0xff] }
  0xae   : > { %1155 = vmatpush1.bf16.msra.mxu0 %v1154_v21  ;;  %1127 = vmatpush1.bf16.msra.mxu1 %v1126_v39  ;;  %v548_v49 = vld [vmem:[#allocation8 + $0x150] sm:$0xff]  ;;  %v1130_v50 = vpack.c.bf16 %v345_v47, %v343_v46  ;;  %v350_v52 = vld [vmem:[#allocation8 + $0xf8] sm:$0xff]  ;;  %v551_v53 = vld [vmem:[#allocation8 + $0x168] sm:$0xff]  ;;  %v1558_v39 = vmov 0.0|0.0   ;;  %p1463_p7 = pnand %p1462_p5, %p1456_p3 }
  0xaf   : > { %1157 = vmatprep.subr.bf16.mxu0 %v1156_v22  ;;  %1129 = vmatprep.subr.bf16.mxu1 %v1128_v43  ;;  %v553_v54 = vld [vmem:[#allocation8 + $0x178] sm:$0xff]  ;;  %v1132_v55 = vpack.c.bf16 %v350_v52, %v348_v51  ;;  %v347_v56 = vld [vmem:[#allocation8 + $0xe0] sm:$0xff]  ;;  %v349_v57 = vld [vmem:[#allocation8 + $0xf0] sm:$0xff]  ;;  %v1166_v59 = vpack.c.bf16 %v548_v49, %v546_v45 }
  0xb0   : > { %v313_v58 = vld [vmem:[#allocation2] sm:$0xff]  ;;  %v352_v61 = vld [vmem:[#allocation8 + $0x108] sm:$0xff]  ;;  %v1168_v62 = vpack.c.bf16 %v553_v54, %v551_v53  ;;  %v552_v63 = vld [vmem:[#allocation8 + $0x170] sm:$0xff]  ;;  %v1134_v2 = vpack.c.bf16 %v349_v57, %v347_v56 }
  0xb1   : > { %v550_v60 = vld [vmem:[#allocation8 + $0x160] sm:$0xff]  ;;  %v555_v1 = vld [vmem:[#allocation8 + $0x188] sm:$0xff]  ;;  %v354_v3 = vld [vmem:[#allocation8 + $0x118] sm:$0xff] }
  0xb2   : > { %1159 = vmatpush1.bf16.msra.mxu0 %v1158_v30  ;;  %1131 = vmatpush1.bf16.msra.mxu1 %v1130_v50  ;;  %v557_v4 = vld [vmem:[#allocation8 + $0x198] sm:$0xff]  ;;  %v1136_v5 = vpack.c.bf16 %v354_v3, %v352_v61  ;;  %v351_v6 = vld [vmem:[#allocation8 + $0x100] sm:$0xff]  ;;  %v353_v7 = vld [vmem:[#allocation8 + $0x110] sm:$0xff]  ;;  %v1170_v11 = vpack.c.bf16 %v552_v63, %v550_v60 }
  0xb3   : > { %1161 = vmatprep.subr.bf16.mxu0 %v1160_v35  ;;  %1133 = vmatprep.subr.bf16.mxu1 %v1132_v55  ;;  %v356_v8 = vld [vmem:[#allocation8 + $0x128] sm:$0xff]  ;;  %v358_v9 = vld [vmem:[#allocation8 + $0x138] sm:$0xff]  ;;  %v1172_v13 = vpack.c.bf16 %v557_v4, %v555_v1  ;;  %v554_v14 = vld [vmem:[#allocation8 + $0x180] sm:$0xff]  ;;  %v1138_v17 = vpack.c.bf16 %v353_v7, %v351_v6 }
  0xb4   : > { %v311_v10 = vld [vmem:[%s1820_s6] sm:$0xff]  ;;  %v314_v12 = vld [vmem:[#allocation2 + $0x8] sm:$0xff]  ;;  %v1140_v19 = vpack.c.bf16 %v358_v9, %v356_v8  ;;  %v355_v20 = vld [vmem:[#allocation8 + $0x120] sm:$0xff] }
  0xb5   : > { %312 = vst.msk [vmem:[#allocation2 + $0x18] sm:$0xff] %vm307_vm0, %v311_v10  ;;  %v556_v15 = vld [vmem:[#allocation8 + $0x190] sm:$0xff]  ;;  %v559_v16 = vld [vmem:[#allocation8 + $0x1a8] sm:$0xff]  ;;  %v561_v18 = vld [vmem:[#allocation8 + $0x1b8] sm:$0xff] }
  0xb6   : > { %1163 = vmatpush1.bf16.msra.mxu0 %v1162_v44  ;;  %1135 = vmatpush1.bf16.msra.mxu1 %v1134_v2  ;;  %v357_v21 = vld [vmem:[#allocation8 + $0x130] sm:$0xff]  ;;  %v1174_v22 = vpack.c.bf16 %v556_v15, %v554_v14  ;;  %v1176_v24 = vpack.c.bf16 %v561_v18, %v559_v16  ;;  %v558_v25 = vld [vmem:[#allocation8 + $0x1a0] sm:$0xff]  ;;  %v563_v28 = vld [vmem:[#allocation8 + $0x1c8] sm:$0xff] }
  0xb7   : > { %1165 = vmatprep.subr.bf16.mxu0 %v1164_v48  ;;  %1137 = vmatprep.subr.bf16.mxu1 %v1136_v5  ;;  %v315_v23 = vld [vmem:[#allocation2 + $0x10] sm:$0xff]  ;;  %v1142_v27 = vpack.c.bf16 %v357_v21, %v355_v20  ;;  %v565_v29 = vld [vmem:[#allocation8 + $0x1d8] sm:$0xff]  ;;  %v779_v30 = vld [vmem:[#allocation9] sm:$0xff] }
  0xb8   : > { %v560_v26 = vld [vmem:[#allocation8 + $0x1b0] sm:$0xff]  ;;  %v780_v31 = vld [vmem:[#allocation9 + $0x8] sm:$0xff]  ;;  %v1180_v33 = vpack.c.bf16 %v565_v29, %v563_v28  ;;  %v562_v34 = vld [vmem:[#allocation8 + $0x1c0] sm:$0xff] }
  0xb9   : > { %1052 = vmatmul.mubr.msk.f32.vlgmr.msra.gmra.mrb[0].mxu0 %vm307_vm0, %v313_v58  ;;  %v1178_v32 = vpack.c.bf16 %v560_v26, %v558_v25  ;;  %v564_v35 = vld [vmem:[#allocation8 + $0x1d0] sm:$0xff]  ;;  %v336_v36 = vld [vmem:[#allocation2 + $0x1] sm:$0xff]  ;;  %v670_v38 = vld [vmem:[#allocation8 + $0x1f8] sm:$0xff]  ;;  %v1189_v40 = vpack.c.bf16 %v780_v31, %v779_v30 }
  0xba   : > { %1167 = vmatpush1.bf16.msra.mxu0 %v1166_v59  ;;  %530 = vmatprep.mubr.f32.mxu0 %v1557_v0  ;;  %v668_v37 = vld [vmem:[#allocation8 + $0x1e8] sm:$0xff]  ;;  %v781_v41 = vld [vmem:[#allocation9 + $0x10] sm:$0xff]  ;;  %v782_v42 = vld [vmem:[#allocation9 + $0x18] sm:$0xff]  ;;  %v1182_v43 = vpack.c.bf16 %v564_v35, %v562_v34 }
  0xbb   : > { %1169 = vmatprep.subr.bf16.mxu0 %v1168_v62  ;;  %1139 = vmatpush1.bf16.msra.mxu1 %v1138_v17  ;;  %v1184_v44 = vpack.c.bf16 %v670_v38, %v668_v37  ;;  %v667_v45 = vld [vmem:[#allocation8 + $0x1e0] sm:$0xff]  ;;  %v669_v46 = vld [vmem:[#allocation8 + $0x1f0] sm:$0xff]  ;;  %v1192_v48 = vpack.c.bf16 %v782_v42, %v781_v41  ;;  %v784_v50 = vld [vmem:[#allocation9 + $0x28] sm:$0xff] }
  0xbc   : > { %1141 = vmatprep.subr.bf16.mxu1 %v1140_v19  ;;  %v337_v47 = vld [vmem:[#allocation2 + $0x9] sm:$0xff]  ;;  %v783_v49 = vld [vmem:[#allocation9 + $0x20] sm:$0xff]  ;;  %v1186_v52 = vpack.c.bf16 %v669_v46, %v667_v45  ;;  %v338_v53 = vld [vmem:[#allocation2 + $0x11] sm:$0xff] }
  0xbd   : > { %1053 = vmatmul.mubr.msk.f32.gmra.mrb[2].mxu0 %vm307_vm0, %v314_v12  ;;  %v543_v51 = vld [vmem:[#allocation2 + $0x2] sm:$0xff]  ;;  %v1195_v54 = vpack.c.bf16 %v784_v50, %v783_v49  ;;  %v785_v55 = vld [vmem:[#allocation9 + $0x30] sm:$0xff]  ;;  %v786_v56 = vld [vmem:[#allocation9 + $0x38] sm:$0xff] }
  0xbe   : > { %1171 = vmatpush1.bf16.msra.mxu0 %v1170_v11  ;;  %536 = vmatprep.mubr.f32.mxu0 %v1557_v0  ;;  %v544_v57 = vld [vmem:[#allocation2 + $0xa] sm:$0xff]  ;;  %v1198_v58 = vpack.c.bf16 %v786_v56, %v785_v55  ;;  %v787_v59 = vld [vmem:[#allocation9 + $0x40] sm:$0xff]  ;;  %v545_v61 = vld [vmem:[#allocation2 + $0x12] sm:$0xff] }
  0xbf   : > { %1173 = vmatprep.subr.bf16.mxu0 %v1172_v13  ;;  %1143 = vmatpush1.bf16.msra.mxu1 %v1142_v27  ;;  %v788_v60 = vld [vmem:[#allocation9 + $0x48] sm:$0xff]  ;;  %v789_v63 = vld [vmem:[#allocation9 + $0x50] sm:$0xff]  ;;  %v790_v1 = vld [vmem:[#allocation9 + $0x58] sm:$0xff] }
  0xc0   : > { %1188 = vmatprep.subr.bf16.mxu1 %v1558_v39  ;;  %v1201_v62 = vpack.c.bf16 %v788_v60, %v787_v59  ;;  %v664_v2 = vld [vmem:[#allocation2 + $0x3] sm:$0xff]  ;;  %v1204_v3 = vpack.c.bf16 %v790_v1, %v789_v63  ;;  %v665_v4 = vld [vmem:[#allocation2 + $0xb] sm:$0xff]  ;;  %v666_v5 = vld [vmem:[#allocation2 + $0x13] sm:$0xff] }
  0xc1   : > { %1054 = vmatmul.mubr.msk.f32.gmra.mrb[4].mxu0 %vm307_vm0, %v315_v23  ;;  %v791_v6 = vld [vmem:[#allocation9 + $0x60] sm:$0xff]  ;;  %v792_v7 = vld [vmem:[#allocation9 + $0x68] sm:$0xff]  ;;  %v793_v9 = vld [vmem:[#allocation9 + $0x70] sm:$0xff] }
  0xc2   : > { %1175 = vmatpush1.bf16.msra.mxu0 %v1174_v22  ;;  %639 = vmatprep.mubr.f32.mxu0 %v1557_v0  ;;  %v1207_v8 = vpack.c.bf16 %v792_v7, %v791_v6  ;;  %v794_v10 = vld [vmem:[#allocation9 + $0x78] sm:$0xff] }
  0xc3   : > { %1177 = vmatprep.subr.bf16.mxu0 %v1176_v24  ;;  %1049 = vmatmul.mubr.msk.f32.vlgmr.msra.gmra.mrb[0].mxu1 %vm307_vm0, %v336_v36  ;;  %v1210_v11 = vpack.c.bf16 %v794_v10, %v793_v9 }
  0xc4   : > { %438 = vmatprep.mubr.f32.mxu1 %v1557_v0  ;;  %1190 = vmatpush3.bf16.msra.mxu1 %v1189_v40 }
  0xc5   : > { %1191 = vmatprep.subr.bf16.mxu1 %v1558_v39 }
  0xc6   : > { %1179 = vmatpush1.bf16.msra.mxu0 %v1178_v32 }
  0xc7   : > { %1181 = vmatprep.subr.bf16.mxu0 %v1180_v33  ;;  %1050 = vmatmul.mubr.msk.f32.gmra.mrb[2].mxu1 %vm307_vm0, %v337_v47 }
  0xc8   : > { %444 = vmatprep.mubr.f32.mxu1 %v1557_v0  ;;  %1193 = vmatpush3.bf16.msra.mxu1 %v1192_v48 }
  0xc9   : > { %1194 = vmatprep.subr.bf16.mxu1 %v1558_v39 }
  0xca   : > { %1183 = vmatpush1.bf16.msra.mxu0 %v1182_v43 }
  0xcb   : > { %1185 = vmatprep.subr.bf16.mxu0 %v1184_v44  ;;  %1051 = vmatmul.mubr.msk.f32.gmra.mrb[4].mxu1 %vm307_vm0, %v338_v53 }
  0xcc   : > { %1196 = vmatpush3.bf16.msra.mxu1 %v1195_v54  ;;  %1115 = vmatprep.mubr.msk.f32.mxu1 %vm1559_vm2, %v1557_v0 }
  0xcd   : > { %1055 = vmatmul.mubr.msk.f32.vlgmr.msra.gmra.mrb[0].mxu0 %vm307_vm0, %v543_v51  ;;  %1197 = vmatprep.subr.bf16.mxu1 %v1558_v39 }
  0xce   : > { %1187 = vmatpush1.bf16.msra.mxu0 %v1186_v52  ;;  %645 = vmatprep.mubr.f32.mxu0 %v1557_v0 }
  0xd0   : > { %1199 = vmatpush3.bf16.msra.mxu1 %v1198_v58 }
  0xd1   : > { %1056 = vmatmul.mubr.msk.f32.gmra.mrb[2].mxu0 %vm307_vm0, %v544_v57  ;;  %1200 = vmatprep.subr.bf16.mxu1 %v1558_v39 }
  0xd2   : > { %651 = vmatprep.mubr.f32.mxu0 %v1557_v0 }
  0xd4   : > { %1202 = vmatpush3.bf16.msra.mxu1 %v1201_v62 }
  0xd5   : > { %1057 = vmatmul.mubr.msk.f32.gmra.mrb[4].mxu0 %vm307_vm0, %v545_v61  ;;  %1203 = vmatprep.subr.bf16.mxu1 %v1558_v39 }
  0xd6   : > { %745 = vmatprep.mubr.f32.mxu0 %v1557_v0 }
  0xd8   : > { %1205 = vmatpush3.bf16.msra.mxu1 %v1204_v3 }
  0xd9   : > { %1058 = vmatmul.mubr.msk.f32.vlgmr.msra.gmra.mrb[0].mxu0 %vm671_vm1, %v664_v2  ;;  %1206 = vmatprep.subr.bf16.mxu1 %v1558_v39 }
  0xda   : > { %751 = vmatprep.mubr.f32.mxu0 %v1557_v0 }
  0xdc   : > { %1208 = vmatpush3.bf16.msra.mxu1 %v1207_v8 }
  0xdd   : > { %1059 = vmatmul.mubr.msk.f32.gmra.mrb[2].mxu0 %vm671_vm1, %v665_v4  ;;  %1209 = vmatprep.subr.bf16.mxu1 %v1558_v39 }
  0xde   : > { %757 = vmatprep.mubr.f32.mxu0 %v1557_v0 }
  0xe0   : > { %1211 = vmatpush3.bf16.msra.mxu1 %v1210_v11 }
  0xe1   : > { %1060 = vmatmul.mubr.msk.f32.gmra.mrb[4].mxu0 %vm671_vm1, %v666_v5 }
 0x196   : > { %v434_v12 = vpop.f32.mrb[0].mxu1 }
 0x197   : > { %v436_v13 = vpop.f32.mrb[1].mxu1 }
 0x19a   : > { %v440_v14 = vpop.f32.mrb[2].mxu1 }
 0x19b   : > { %v442_v15 = vpop.f32.mrb[3].mxu1 }
 0x19e   : > { %v446_v16 = vpop.f32.mrb[4].mxu1 }
 0x19f   : > { %v448_v17 = vpop.f32.mrb[5].mxu1 }
 0x1ac   : > { %v747_v18 = vpop.f32.mrb[0].mxu0 }
 0x1ad   : > { %v1212_v19 = vadd.f32 %v747_v18, %v434_v12  ;;  %v749_v20 = vpop.f32.mrb[1].mxu0 }
 0x1ae   : > { %v1213_v21 = vadd.f32 %v749_v20, %v436_v13 }
 0x1af   : > { %v770_v22 = vmul.f32 %v1212_v19, %v1212_v19 }
 0x1b0   : > { %v773_v23 = vmul.f32 %v1213_v21, %v1213_v21  ;;  %v753_v24 = vpop.f32.mrb[2].mxu0 }
 0x1b1   : > { %v1214_v25 = vadd.f32 %v753_v24, %v440_v14  ;;  %v755_v26 = vpop.f32.mrb[3].mxu0 }
 0x1b2   : > { %v776_v27 = vadd.f32 %v773_v23, %v770_v22  ;;  %v1215_v28 = vadd.f32 %v755_v26, %v442_v15 }
 0x1b3   : > { %v771_v29 = vmul.f32 %v1214_v25, %v1214_v25 }
 0x1b4   : > { %v774_v30 = vmul.f32 %v1215_v28, %v1215_v28  ;;  %v759_v31 = vpop.f32.mrb[4].mxu0  ;;  %1116 = vmatmul.mubr.f32.vlgmr.msra.gmra.mrb[6].mxu1 %v776_v27 }
 0x1b5   : > { %v1216_v32 = vadd.f32 %v759_v31, %v446_v16  ;;  %v761_v33 = vpop.f32.mrb[5].mxu0  ;;  %1118 = vmatprep.mubr.msk.f32.mxu1 %vm1559_vm2, %v1557_v0 }
 0x1b6   : > { %v777_v34 = vadd.f32 %v774_v30, %v771_v29  ;;  %v1217_v35 = vadd.f32 %v761_v33, %v448_v17 }
 0x1b7   : > { %v772_v36 = vmul.f32 %v1216_v32, %v1216_v32 }
 0x1b8   : > { %v775_v37 = vmul.f32 %v1217_v35, %v1217_v35  ;;  %1119 = vmatmul.mubr.f32.gmra.mrb[8].mxu1 %v777_v34 }
 0x1b9   : > { %1121 = vmatprep.mubr.msk.f32.mxu1 %vm1559_vm2, %v1557_v0 }
 0x1ba   : > { %v778_v38 = vadd.f32 %v775_v37, %v772_v36 }
 0x1bc   : > { %1122 = vmatmul.mubr.f32.gmra.mrb[10].mxu1 %v778_v38 }
 0x287   : > { %v861_v39 = vpop.f32.mrb[6].mxu1 }
 0x288   : > { %v862_v40 = vadd.f32 1e-05, %v861_v39  ;;  %v1117_v41 = vpop.f32.mrb[7].mxu1 }
 0x28a   : > { %1331 = vlog2.f32 %v862_v40 }
 0x28b   : > { %v866_v42 = vpop.f32.mrb[8].mxu1 }
 0x28c   : > { %v867_v43 = vadd.f32 1e-05, %v866_v42  ;;  %v1120_v44 = vpop.f32.mrb[9].mxu1 }
 0x28e   : > { %1333 = vlog2.f32 %v867_v43 }
 0x28f   : > { %v871_v45 = vpop.f32.mrb[10].mxu1 }
 0x290   : > { %v872_v46 = vadd.f32 1e-05, %v871_v45  ;;  %v1123_v47 = vpop.f32.mrb[11].mxu1 }
 0x292   : > { %1335 = vlog2.f32 %v872_v46 }
 0x294   : > { %v1332_v48 = vpop.eup %1331 }
 0x295   : > { %v876_v49 = vmul.f32 0.6931472, %v1332_v48 }
 0x297   : > { %v881_v50 = vadd.f32 4.5, %v876_v49 }
 0x298   : > { %v1334_v0 = vpop.eup %1333 }
 0x299   : > { %v884_v51 = vmul.f32 0.2, %v881_v50  ;;  %v878_v52 = vmul.f32 0.6931472, %v1334_v0 }
 0x29b   : > { %887 = vst [vmem:[%s302_s21] sm:$0xff] %v884_v51  ;;  %v882_v53 = vadd.f32 4.5, %v878_v52 }
 0x29c   : > { %v1336_v54 = vpop.eup %1335 }
 0x29d   : > { %v885_v55 = vmul.f32 0.2, %v882_v53  ;;  %v880_v56 = vmul.f32 0.6931472, %v1336_v54 }
 0x29f   : > { %888 = vst [vmem:[%s302_s21 + $0x8] sm:$0xff] %v885_v55  ;;  %v883_v57 = vadd.f32 4.5, %v880_v56 }
 0x2a1   : > { %v886_v58 = vmul.f32 0.2, %v883_v57 }
 0x2a3   : > { %889 = vst [vmem:[%s302_s21 + $0x10] sm:$0xff] %v886_v58 }
 0x2a4   : > { %1466 = shalt.err (!%p1463_p7)
}
 0x2a5   : > { %s1467_s8 = scalar_lea.hbm %s1885_s10, 384  ;;  %s1471_s26 = scalar_lea.hbm %s1938_s4, 768 }
 0x2a6   : > { %p1468_p13 = scmp.ne.s32.totalorder %s1885_s10, %s1467_s8  ;;  %p1472_p2 = scmp.lt.u32.totalorder %s1885_s10, %s1938_s4 }
 0x2a7   : > { %p1473_p11 = scmp.lt.u32.totalorder %s1471_s26, %s1467_s8  ;;  %p1475_p1 = scmp.lt.u32.totalorder %s1467_s8, %s1885_s10 }
 0x2a8   : > { %p1469_p8 = pnand %p1468_p13, %p1966_p6 }
 0x2a9   : > { %p1474_p0 = por %p1473_p11, %p1472_p2 }
 0x2aa   : > { %p1470_p12 = pneg %p1469_p8 }
 0x2ab   : > { %p1476_p10 = por %p1475_p1, %p1474_p0 }
 0x2ad   : > { %p1477_p3 = pnand %p1476_p10, %p1470_p12 }
 0x2af   : > { %1480 = shalt.err (!%p1477_p3)
}
 0x2b0   : > { %s1561_s3 = smov 128   ;;  %s1562_s25 = smov 8  }
 0x2b1   : > { %1246 = dma.vmem_to_hbm [thread:$0]  (%p1966_p6), %s1880_s23, 384, %s1885_s10, %s891_s14, %s1561_s3, %s1561_s3, %s1562_s25  }
 0x2b2 PF: > { %s921_s6 = sand.u32 1, %s1527_s15   ;;  %p1967_p4 = scmp.ne.s32.totalorder %s1949_s24, 0 }
 0x2b3   : > { %p1968_p9 = scmp.ge.s32.totalorder %s1547_s20, 2  ;;  %s922_s21 = scalar_lea.sflag [#allocation5], %s921_s6 }
 0x2b5   : > { %p1263_p5 = pnand %p1968_p9, %p1967_p4 }
 0x2b7   : > { %1522 = dma.done.wait (!%p1263_p5), %s922_s21, 384  }
 0x2b8   : > { %1524 = vsyncadd (!%p1263_p5), %s922_s21, 4294966912  ;;  %s24_s20 = sadd.s32 1, %s1547_s20   ;;  %s1969_s28 = sld [smem:[#allocation17_spill]] }
 0x2b9   : > { %p21_p7 = scmp.ge.s32.totalorder %s24_s20, 4   ;;  %s1970_s15 = smov %s1531_s16 }
 0x2ba   : > { %s1971_s16 = smov %s1535_s17  ;;  %s1972_s17 = smov %s1735_s7 }
 0x2bb   : > { %s1973_s18 = smov %s1543_s19  ;;  %23 = sbr.rel (!%p21_p7) target bundleno = 13 (0xd), region = 102 }
 0x2be   : > { %s1974_s19 = smov %s1969_s28 }
 0x2c2   :  { %927 = vsyncpa [#allocation4], 1 }
 0x2c3   :  { %929 = vsyncpa [#allocation4 + $0x1], 1 }
 0x2c4   :  { %930 = vsyncpa [#allocation7], 1 }
 0x2c5   :  { %932 = vsyncpa [#allocation7 + $0x1], 1 }
 0x2c6   :  { %933 = vsyncpa [#allocation10], 1 }
 0x2c7   :  { %934 = vsyncpa [#allocation5], 1 }
 0x2c8   :  { %936 = vsyncpa [#allocation5 + $0x1], 1 }

</bundles_post_ra>
